<compile_context>
chip_gen: v7x
topology: tpu7x:2x2x1
jax: 0.10.0
libtpu: 0.0.40
codegen_flags: <defaults>
</compile_context>

<pallas_src>
import jax
import jax.numpy as jnp
from jax.experimental import pallas as pl
from jax.experimental.pallas import tpu as pltpu


def _add_pos_kernel(x_ref, pos_ref, o_ref):
    # (TR, L) VMEM tiles (batch dim squeezed).  Cast pos in-kernel so a
    # mismatched table dtype never costs an extra HBM round-trip.
    # TODO(synk): PyTorch promote-then-add would widen the *output* for
    # mixed dtypes; here the output stays x.dtype (negligible in practice).
    o_ref[...] = x_ref[...] + pos_ref[...].astype(x_ref.dtype)


_TARGET_BLOCK_BYTES = 4 * 1024 * 1024   # ~4 MiB/block -> 3 arrays x 2 bufs = 24 MiB in flight
_VMEM_LIMIT_BYTES = 48 * 1024 * 1024    # explicit headroom (> scoped defaults, < v7x physical)


def _sublane(itemsize):
    # 8 sublanes of 32-bit; sub-32-bit dtypes pack along sublanes.
    return max(8, (8 * 4) // max(1, itemsize))


def _choose_tile_rows(total_rows, lane_width, itemsize, sub):
    """Largest sublane-aligned row count whose (rows, lane_width) tile ~= 4 MiB."""
    if total_rows <= sub:
        return total_rows                      # full extent (always legal)
    rows = _TARGET_BLOCK_BYTES // max(1, lane_width * itemsize)
    rows = max(sub, (rows // sub) * sub)
    # Never exceed the array (floor to sublane; the trailing partial tile is
    # handled by Pallas' normal block clipping).  No artificial row cap.
    return min(rows, (total_rows // sub) * sub)


def learned_positional_encoding(x, pos_embedding, *, tile_rows=None, donate_x=False):
    """out = x + pos_embedding[:, :S, :].

    x:             (B, S, E)
    pos_embedding: (1, max_seq_len, E) with max_seq_len >= S
    donate_x:      alias the output onto x's buffer (only if x is dead after).
    """
    B, S, E = x.shape
    assert pos_embedding.ndim == 3 and pos_embedding.shape[0] == 1
    max_seq_len = pos_embedding.shape[1]
    assert pos_embedding.shape[2] == E and max_seq_len >= S

    itemsize = jnp.dtype(x.dtype).itemsize
    sub = _sublane(itemsize)

    # Layout choice:
    #   E % 128 == 0          -> keep (B, S, E), tile the sequence axis.
    #   elif (S*E) % 128 == 0 -> flatten trailing dims to lane-dense (rows, 128).
    #   else                  -> fall back to (tile_s, E) blocks (masked stores).
    flatten = (E % 128 != 0) and ((S * E) % 128 == 0)

    if flatten:
        lane = 128
        rows_total = (S * E) // lane
        x3 = x.reshape(B, rows_total, lane)                       # free row-major reshape
        if (max_seq_len * E) % lane == 0:
            # Reshape the whole table (free); only its first rows_total rows are
            # ever addressed through the BlockSpec -> no slice copy.
            pos3 = pos_embedding.reshape(1, (max_seq_len * E) // lane, lane)
        else:
            # Table extent not lane-divisible: one small slice copy of S rows.
            pos3 = pos_embedding[:, :S, :].reshape(1, rows_total, lane)
    else:
        lane = E
        rows_total = S
        x3 = x
        pos3 = pos_embedding

    auto = tile_rows is None
    if auto:
        tile_rows = _choose_tile_rows(rows_total, lane, itemsize, sub)
    assert tile_rows % sub == 0 or tile_rows == rows_total

    # v7x has 2 TensorCores: avoid a degenerate 1-iteration grid by splitting
    # the row axis in two when possible (both grid axes are "parallel").
    if auto and B == 1 and pl.cdiv(rows_total, tile_rows) == 1 and rows_total >= 2 * sub:
        half = (rows_total + 1) // 2
        tile_rows = ((half + sub - 1) // sub) * sub

    grid = (pl.cdiv(rows_total, tile_rows), B)   # batch innermost -> pos tile reused across B

    out3 = pl.pallas_call(
        _add_pos_kernel,
        out_shape=jax.ShapeDtypeStruct((B, rows_total, lane), x.dtype),
        grid_spec=pltpu.PrefetchScalarGridSpec(
            num_scalar_prefetch=0,
            grid=grid,
            in_specs=[
                # x: one (TR, L) tile of batch row b.
                pl.BlockSpec((None, tile_rows, lane), lambda r, b: (b, r, 0)),
                # pos: same (TR, L) tile for every batch element; only the
                # first-S (or first rows_total) rows are ever addressed.
                pl.BlockSpec((None, tile_rows, lane), lambda r, b: (0, r, 0)),
            ],
            out_specs=pl.BlockSpec((None, tile_rows, lane), lambda r, b: (b, r, 0)),
        ),
        compiler_params=pltpu.CompilerParams(
            dimension_semantics=("parallel", "parallel"),
            vmem_limit_bytes=_VMEM_LIMIT_BYTES,
        ),
        input_output_aliases=({0: 0} if donate_x else {}),
    )(x3, pos3)

    return out3.reshape(B, S, E) if flatten else out3


def init_pos_embedding(key, max_seq_len, embed_dim, std=0.02, dtype=jnp.float32):
    # Matches nn.init.trunc_normal_(std=0.02): truncated normal in [-2, 2] * std.
    tn = jax.random.truncated_normal(key, -2.0, 2.0, (1, max_seq_len, embed_dim), dtype)
    return tn * std


if __name__ == "__main__":
    key = jax.random.PRNGKey(0)
    k_x, k_pos, k_x2, k_pos2, k_x3, k_pos3 = jax.random.split(key, 6)

    # Case 1: lane-dense embed dim (multiple of 128), several S-tiles
    # (tile_rows forced small to exercise the tiled / pos-reuse path).
    B, S, E, max_seq_len = 2, 256, 256, 384
    x = jax.random.normal(k_x, (B, S, E), dtype=jnp.float32)
    pos_embedding = init_pos_embedding(k_pos, max_seq_len, E)

    out = jax.block_until_ready(learned_positional_encoding(x, pos_embedding, tile_rows=64))
    ref = x + pos_embedding[:, :S, :]
    assert out.shape == (B, S, E)
    assert jnp.allclose(out, ref, atol=1e-6), "case 1: mismatch vs reference"

    # Case 2: E not a multiple of 128 but S*E is -> lane-dense flatten path,
    # with a trailing partial row-tile (30 rows -> 24 + 6).
    B2, S2, E2, max_seq_len2 = 2, 40, 96, 64
    x2 = jax.random.normal(k_x2, (B2, S2, E2), dtype=jnp.float32)
    pos_embedding2 = init_pos_embedding(k_pos2, max_seq_len2, E2)

    out2 = jax.block_until_ready(learned_positional_encoding(x2, pos_embedding2))
    ref2 = x2 + pos_embedding2[:, :S2, :]
    assert out2.shape == (B2, S2, E2)
    assert jnp.allclose(out2, ref2, atol=1e-6), "case 2: mismatch vs reference"

    # Case 3: mixed dtypes (bf16 activations, f32 table) -> in-kernel cast,
    # B=1 so the two-tile split-for-megacore path is exercised.
    B3, S3, E3, max_seq_len3 = 1, 64, 128, 128
    x3 = jax.random.normal(k_x3, (B3, S3, E3), dtype=jnp.bfloat16)
    pos_embedding3 = init_pos_embedding(k_pos3, max_seq_len3, E3)

    out3 = jax.block_until_ready(learned_positional_encoding(x3, pos_embedding3))
    ref3 = x3 + pos_embedding3[:, :S3, :].astype(jnp.bfloat16)
    assert out3.shape == (B3, S3, E3) and out3.dtype == jnp.bfloat16
    assert jnp.allclose(out3.astype(jnp.float32), ref3.astype(jnp.float32),
                        atol=1e-2), "case 3: mismatch vs reference"

    print("KERNEL_OK")
</pallas_src>

<mosaic_0001>
module attributes {stable_mosaic.version = 11 : i64} {
  func.func @_add_pos_kernel(%arg0: i32, %arg1: i32, %arg2: memref<1x64x256xf32, #tpu.memory_space<vmem>>, %arg3: memref<1x64x256xf32, #tpu.memory_space<vmem>>, %arg4: memref<1x64x256xf32, #tpu.memory_space<vmem>>) attributes {dimension_semantics = [#tpu.dimension_semantics<parallel>, #tpu.dimension_semantics<parallel>], iteration_bounds = array<i64: 4, 2>, scalar_prefetch = 0 : i64, scratch_operands = 0 : i64, tpu.core_type = #tpu.core_type<tc>, window_params = [{transform_indices = @transform_0, window_bounds = array<i64: 1, 64, 256>}, {transform_indices = @transform_1, window_bounds = array<i64: 1, 64, 256>}, {transform_indices = @transform_2, window_bounds = array<i64: 1, 64, 256>}]} {
    %c0 = arith.constant 0 : index
    %c0_0 = arith.constant 0 : index
    %c0_1 = arith.constant 0 : index
    %0 = vector.load %arg2[%c0, %c0_0, %c0_1] : memref<1x64x256xf32, #tpu.memory_space<vmem>>, vector<1x64x256xf32>
    %1 = vector.shape_cast %0 : vector<1x64x256xf32> to vector<64x256xf32>
    %c0_2 = arith.constant 0 : index
    %c0_3 = arith.constant 0 : index
    %c0_4 = arith.constant 0 : index
    %2 = vector.load %arg3[%c0_2, %c0_3, %c0_4] : memref<1x64x256xf32, #tpu.memory_space<vmem>>, vector<1x64x256xf32>
    %3 = vector.shape_cast %2 : vector<1x64x256xf32> to vector<64x256xf32>
    %4 = arith.addf %1, %3 : vector<64x256xf32>
    %c0_5 = arith.constant 0 : index
    %c0_6 = arith.constant 0 : index
    %c0_7 = arith.constant 0 : index
    %5 = vector.load %arg4[%c0_5, %c0_6, %c0_7] : memref<1x64x256xf32, #tpu.memory_space<vmem>>, vector<1x64x256xf32>
    %6 = vector.shape_cast %5 : vector<1x64x256xf32> to vector<64x256xf32>
    %7 = vector.shape_cast %4 : vector<64x256xf32> to vector<1x64x256xf32>
    tpu.vector_store %arg4[%c0_5, %c0_6, %c0_7], %7 {strides = array<i32>} : memref<1x64x256xf32, #tpu.memory_space<vmem>>, vector<1x64x256xf32>,
    return
  }
  func.func @transform_0(%arg0: i32, %arg1: i32) -> (i32, i32, i32) {
    %c0_i32 = arith.constant 0 : i32
    %c0_i32_0 = arith.constant 0 : i32
    return %arg1, %arg0, %c0_i32 : i32, i32, i32
  }
  func.func @transform_1(%arg0: i32, %arg1: i32) -> (i32, i32, i32) {
    %c0_i32 = arith.constant 0 : i32
    %c0_i32_0 = arith.constant 0 : i32
    %c0_i32_1 = arith.constant 0 : i32
    return %c0_i32, %arg0, %c0_i32_0 : i32, i32, i32
  }
  func.func @transform_2(%arg0: i32, %arg1: i32) -> (i32, i32, i32) {
    %c0_i32 = arith.constant 0 : i32
    %c0_i32_0 = arith.constant 0 : i32
    return %arg1, %arg0, %c0_i32 : i32, i32, i32
  }
}

</mosaic_0001>

<bundles_post_ra>
// kernel: tpu_custom_call.1
= control target key start
LH: loop header
LB: loop body
LE: loop exit
PB: predicated region body
PF: predicated region fallthrough
CT: control target
= control target key end

     0   :  { %s1139_s0 = inlined_call_operand.hbm [shape: f32[2,256,256], index: 0, kind: input, shape index: {}]   ;;  %s1140_s1 = inlined_call_operand.hbm [shape: f32[1,384,256], index: 1, kind: input, shape index: {}]   ;;  %s1141_s2 = inlined_call_operand.hbm [shape: f32[2,256,256], index: 2, kind: output, shape index: {}]  }
   0x1   :  { %1153 = sst [smem:[#allocation14_spill]] %s1141_s2 }
   0x2   :  { %7 = vsyncpa [#allocation3], 0 }
   0x3   :  { %9 = vsyncpa [#allocation3 + $0x1], 0 }
   0x4   :  { %10 = vsyncpa [#allocation6], 0 }
   0x5   :  { %12 = vsyncpa [#allocation6 + $0x1], 0 }
   0x6   :  { %13 = vsyncpa [#allocation4], 0 }
   0x7   :  { %15 = vsyncpa [#allocation4 + $0x1], 0  ;;  %s768_s9 = smov 0   ;;  %s770_s10 = smov 0  }
   0x8   :  { %s772_s11 = smov 0   ;;  %s774_s12 = smov 0  }
   0x9   :  { %s776_s13 = smov 0   ;;  %s778_s14 = smov 0  }
   0xa   :  { %s780_s15 = smov 0   ;;  %s782_s16 = smov 0  }
   0xb   :  { %s784_s17 = smov 0   ;;  %s786_s18 = smov 0  }
   0xc   :  { %s788_s19 = smov 0  }
   0xd LB: > { %1154 = sst [smem:[#allocation11_spill]] %s716_s12  ;;  %s419_s20 = sadd.s32 4294967295, %s744_s19   ;;  %s744_s19 = sphi %s788_s19, %s21_s19   ;;  %s740_s18 = sphi %s786_s18, %s1190_s18   ;;  %s736_s17 = sphi %s784_s17, %s1189_s17   ;;  %s732_s16 = sphi %s782_s16, %s1188_s16   ;;  %s728_s15 = sphi %s780_s15, %s1187_s15   ;;  %s724_s14 = sphi %s778_s14, %s1186_s14   ;;  %s720_s13 = sphi %s776_s13, %s1185_s13   ;;  %s716_s12 = sphi %s774_s12, %s1184_s12   ;;  %s712_s11 = sphi %s772_s11, %s1183_s11   ;;  %s708_s10 = sphi %s770_s10, %s1182_s10   ;;  %s704_s9 = sphi %s768_s9, %s1181_s9  }
   0xe   : > { %s420_s21 = sadd.s32 4294967294, %s744_s19   ;;  %s30_s22 = sadd.s32 1, %s736_s17 }
   0xf   : > { %s33_s23 = sadd.s32 1, %s740_s18  ;;  %p31_p0 = scmp.ge.s32.totalorder %s30_s22, 2 }
  0x10   : > { %s42_s24 = sadd.s32 1, %s724_s14  ;;  %p49_p1 = scmp.ne.s32.totalorder %s724_s14, %s720_s13 }
  0x11   : > { %p1147_p2 = scmp.eq.s32.totalorder %s744_s19, 0  ;;  %s1192_s22 = smov (%p31_p0, %s30_s22), 0 }
  0x12   : > { %1155 = sst [smem:[#allocation12_spill]] %s1192_s22  ;;  %s1194_s23 = smov (!%p31_p0, %s33_s23), %s740_s18 }
  0x13   : > { %s37_s25 = ssub.s32 %s736_s17, %s1192_s22  ;;  %p838_p3 = por %p1147_p2, %p49_p1 }
  0x14   : > { %p35_p4 = scmp.ge.s32.totalorder %s1194_s23, 4  ;;  %p55_p5 = scmp.ne.s32.totalorder %s720_s13, %s716_s12 }
  0x15   : > { %p844_p6 = scmp.eq.s32.totalorder %s419_s20, 0  ;;  %p107_p7 = scmp.eq.s32.totalorder %s419_s20, 7 }
  0x16   : > { %s1196_s23 = smov (%p35_p4, %s1194_s23), 0  ;;  %p113_p10 = scmp.eq.s32.totalorder %s420_s21, 7 }
  0x17   : > { %1158 = sst [smem:[#allocation13_spill]] %s1196_s23  ;;  %p852_p8 = por %p844_p6, %p55_p5 }
  0x18   : > { %p856_p9 = por %p107_p7, %p49_p1  ;;  %s862_s30 = ssub.s32 %s740_s18, %s1196_s23 }
  0x19   : > { %s1159_s28 = scalar_select %p852_p8, 1, 0 }
  0x1a   : > { %s1160_s29 = scalar_select %p856_p9, 1, 0 }
  0x1b   : > { %s39_s3 = sor.u32 %s862_s30, %s37_s25  ;;  %p866_p13 = por %p113_p10, %p55_p5 }
  0x1c   : > { %p40_p12 = scmp.eq.s32.totalorder %s39_s3, 0  ;;  %p1146_p0 = scmp.lt.s32.totalorder %s744_s19, 8 }
  0x1d   : > { %s1161_s4 = scalar_select %p866_p13, 1, 0 }
  0x1e   : > { %s872_s5 = scalar_select %p40_p12, %s724_s14, %s42_s24  }
  0x1f   : > { %s133_s6 = sand.u32 1, %s724_s14   ;;  %s443_s7 = sshll.u32 %s740_s18, 4 }
  0x20   : > { %s423_s8 = sshll.u32 %s133_s6, 7  ;;  %s426_s20 = sshll.u32 %s736_s17, 6 }
  0x21   : > { %s144_s23 = sadd.s32 %s443_s7, %s426_s20  ;;  %s137_s22 = scalar_lea.vmem [#allocation2], %s423_s8 }
  0x22   : > { %s147_s21 = sshll.u32 %s137_s22, 4  ;;  %s427_s25 = sshll.u32 %s144_s23, 7  ;;  %s877_s21 = int_to_ptr.vmem [resolvable:$true] %s147_s21 }
  0x23   : > { %s882_s3 = scalar_lea.hbm %s1139_s0, %s427_s25  ;;  %p888_p1 = pnand %p1146_p0, %p838_p3 }
  0x24   : > { %s893_s22 = scalar_lea.sflag [#allocation3], %s133_s6  ;;  %s558_s23 = scalar_lea.hbm %s882_s3, 2048 }
  0x25   : > { %p559_p5 = scmp.ne.s32.totalorder %s882_s3, %s558_s23  ;;  %p560_p7 = pneg %p888_p1 }
  0x26   : > { %s563_s26 = scalar_lea.hbm %s1139_s0, 16384  ;;  %p564_p3 = scmp.lt.u32.totalorder %s882_s3, %s1139_s0 }
  0x27   : > { %p561_p10 = pnand %p560_p7, %p559_p5  ;;  %p565_p0 = scmp.lt.u32.totalorder %s563_s26, %s558_s23 }
  0x28   : > { %p567_p11 = scmp.lt.u32.totalorder %s558_s23, %s882_s3 }
  0x29   : > { %p562_p12 = pneg %p561_p10  ;;  %p566_p2 = por %p565_p0, %p564_p3 }
  0x2b   : > { %p568_p4 = por %p567_p11, %p566_p2 }
  0x2d   : > { %p569_p13 = pnand %p568_p4, %p562_p12 }
  0x2f   : > { %572 = shalt.err (!%p569_p13)
}
  0x30   : > { %s573_s6 = scalar_lea.vmem %s877_s21, 2048  ;;  %s746_s20 = smov [#allocation2]  }
  0x31   : > { %p574_p5 = scmp.ne.s32.totalorder %s877_s21, %s573_s6  ;;  %s578_s25 = sshll.u32 %s746_s20, 4  ;;  %s579_s25 = int_to_ptr.vmem [resolvable:$false] %s578_s25 }
  0x32   : > { %s580_s2 = scalar_lea.vmem %s579_s25, 4096  ;;  %p581_p8 = scmp.lt.s32.totalorder %s877_s21, %s579_s25 }
  0x33   : > { %p576_p10 = pnand %p574_p5, %p560_p7  ;;  %p582_p0 = scmp.lt.s32.totalorder %s580_s2, %s573_s6 }
  0x35   : > { %p577_p9 = pneg %p576_p10  ;;  %p583_p3 = por %p582_p0, %p581_p8 }
  0x37   : > { %p584_p2 = pnand %p583_p3, %p577_p9 }
  0x39   : > { %587 = shalt.err (!%p584_p2)
}
  0x3a   : > { %s1150_s23 = smov 256   ;;  %s1151_s12 = smov 16  }
  0x3b   : > { %456 = dma.hbm_to_vmem [thread:$0]  (!%p888_p1), %s882_s3, 2048, %s877_s21, %s893_s22, %s1150_s23, %s1150_s23, %s1151_s12  }
  0x3c   : > { %p177_p8 = scmp.lt.s32.totalorder %s744_s19, 9  ;;  %p1163_p9 = scmp.ge.s32.totalorder %s744_s19, 1 }
  0x3d   : > { %s68_s7 = sadd.s32 1, %s712_s11  ;;  %p75_p13 = scmp.ne.s32.totalorder %s712_s11, %s708_s10 }
  0x3e   : > { %p927_p11 = pnand %p1163_p9, %p177_p8  ;;  %p1165_p4 = scmp.eq.s32.totalorder %s862_s30, 0 }
  0x3f   : > { %p1166_p7 = scmp.eq.s32.totalorder %s744_s19, 0  ;;  %p81_p5 = scmp.ne.s32.totalorder %s708_s10, %s704_s9 }
  0x40   : > { %s937_s8 = scalar_select %p1165_p4, %s712_s11, %s68_s7  }
  0x41   : > { %p77_p12 = por %p75_p13, %p1166_p7  ;;  %s157_s6 = sand.u32 1, %s712_s11  }
  0x42   : > { %s445_s24 = sshll.u32 %s740_s18, 11  ;;  %p947_p10 = por %p81_p5, %p844_p6 }
  0x43   : > { %s428_s21 = sshll.u32 %s157_s6, 7  ;;  %s954_s25 = scalar_lea.hbm %s1140_s1, %s445_s24 }
  0x44   : > { %s1167_s20 = scalar_select %p947_p10, 1, 0 }
  0x45   : > { %p1168_p1 = scmp.lt.s32.totalorder %s744_s19, 8  ;;  %s161_s27 = scalar_lea.vmem [#allocation5], %s428_s21 }
  0x46   : > { %s169_s30 = sshll.u32 %s161_s27, 4  ;;  %s964_s2 = scalar_lea.sflag [#allocation6], %s157_s6  ;;  %s962_s30 = int_to_ptr.vmem [resolvable:$true] %s169_s30 }
  0x47   : > { %p958_p0 = pnand %p1168_p1, %p77_p12  ;;  %s588_s7 = scalar_lea.hbm %s954_s25, 2048 }
  0x48   : > { %p589_p6 = scmp.ne.s32.totalorder %s954_s25, %s588_s7  ;;  %s593_s22 = scalar_lea.hbm %s1140_s1, 12288 }
  0x49   : > { %p590_p3 = pneg %p958_p0  ;;  %p594_p9 = scmp.lt.u32.totalorder %s954_s25, %s1140_s1 }
  0x4a   : > { %p595_p13 = scmp.lt.u32.totalorder %s593_s22, %s588_s7  ;;  %p597_p7 = scmp.lt.u32.totalorder %s588_s7, %s954_s25 }
  0x4b   : > { %p591_p2 = pnand %p590_p3, %p589_p6 }
  0x4c   : > { %p596_p4 = por %p595_p13, %p594_p9 }
  0x4d   : > { %p592_p8 = pneg %p591_p2 }
  0x4e   : > { %p598_p12 = por %p597_p7, %p596_p4 }
  0x50   : > { %p599_p5 = pnand %p598_p12, %p592_p8 }
  0x52   : > { %602 = shalt.err (!%p599_p5)
}
  0x53   : > { %s603_s6 = scalar_lea.vmem %s962_s30, 2048  ;;  %s749_s21 = smov [#allocation5]  }
  0x54   : > { %p604_p1 = scmp.ne.s32.totalorder %s962_s30, %s603_s6  ;;  %s608_s27 = sshll.u32 %s749_s21, 4  ;;  %s609_s27 = int_to_ptr.vmem [resolvable:$false] %s608_s27 }
  0x55   : > { %s610_s23 = scalar_lea.vmem %s609_s27, 4096  ;;  %p611_p10 = scmp.lt.s32.totalorder %s962_s30, %s609_s27 }
  0x56   : > { %p606_p6 = pnand %p604_p1, %p590_p3  ;;  %p612_p9 = scmp.lt.s32.totalorder %s610_s23, %s603_s6 }
  0x58   : > { %p607_p2 = pneg %p606_p6  ;;  %p613_p13 = por %p612_p9, %p611_p10 }
  0x5a   : > { %p614_p4 = pnand %p613_p13, %p607_p2 }
  0x5c   : > { %617 = shalt.err (!%p614_p4)
}
  0x5d   : > { %s1170_s12 = smov 16   ;;  %s1171_s7 = smov 256  }
  0x5e   : > { %459 = dma.hbm_to_vmem [thread:$0]  (!%p958_p0), %s954_s25, 2048, %s962_s30, %s964_s2, %s1171_s7, %s1171_s7, %s1170_s12  }
  0x5f   : > { %181 = sbr.rel (%p927_p11) target bundleno = 141 (0x8d), region = 28  ;;  %s998_s24 = sand.u32 (!%p927_p11), 1, %s720_s13  }
  0x60   : > { %s433_s3 = sshll.u32 (!%p927_p11), %s998_s24, 7  ;;  %s184_s22 = scalar_lea.sflag (!%p927_p11), [#allocation3], %s998_s24 }
  0x61   : > { %s1002_s6 = scalar_lea.vmem (!%p927_p11), [#allocation2], %s433_s3  ;;  %p1172_p10 = scmp.ne.s32.totalorder (!%p927_p11), %s1159_s28, 0 }
  0x66   : > { %691 = dma.done.wait (%p1172_p10), %s184_s22, 2048  }
  0x67   : > { %693 = vsyncadd (%p1172_p10), %s184_s22, 4294965248  ;;  %s192_s25 = sand.u32 1, %s708_s10   ;;  %p1173_p11 = scmp.ne.s32.totalorder %s1167_s20, 0 }
  0x68   : > { %s434_s26 = sshll.u32 %s192_s25, 7  ;;  %s193_s9 = scalar_lea.sflag [#allocation6], %s192_s25 }
  0x69   : > { %s1009_s30 = scalar_lea.vmem [#allocation5], %s434_s26 }
  0x6a   : > { %695 = dma.done.wait (%p1173_p11), %s193_s9, 2048  }
  0x6b   : > { %697 = vsyncadd (%p1173_p11), %s193_s9, 4294965248  ;;  %v225_v0 = vld [vmem:[%s1002_s6] sm:$0xff]  ;;  %v226_v2 = vld [vmem:[%s1002_s6 + $0x8] sm:$0xff]  ;;  %s446_s28 = sshll.u32 %s732_s16, 4  ;;  %s439_s20 = sshll.u32 %s728_s15, 6 }
  0x6c   : > { %v241_v1 = vld [vmem:[%s1009_s30] sm:$0xff]  ;;  %v242_v4 = vld [vmem:[%s1009_s30 + $0x8] sm:$0xff]  ;;  %v227_v5 = vld [vmem:[%s1002_s6 + $0x10] sm:$0xff]  ;;  %s1026_s2 = scalar_lea.vmem [#allocation7], %s433_s3  ;;  %s1037_s15 = sadd.s32 %s446_s28, %s439_s20 }
  0x6d   : > { %v257_v3 = vadd.f32 %v241_v1, %v225_v0  ;;  %v243_v6 = vld [vmem:[%s1009_s30 + $0x10] sm:$0xff]  ;;  %v258_v7 = vadd.f32 %v242_v4, %v226_v2  ;;  %v228_v9 = vld [vmem:[%s1002_s6 + $0x18] sm:$0xff]  ;;  %v229_v11 = vld [vmem:[%s1002_s6 + $0x20] sm:$0xff]  ;;  %s440_s16 = sshll.u32 %s1037_s15, 7  ;;  %s306_s21 = sshll.u32 %s1026_s2, 4  ;;  %s1072_s21 = int_to_ptr.vmem [resolvable:$true] %s306_s21 }
  0x6e   : > { %v259_v8 = vadd.f32 %v243_v6, %v227_v5  ;;  %v244_v10 = vld [vmem:[%s1009_s30 + $0x18] sm:$0xff]  ;;  %v245_v13 = vld [vmem:[%s1009_s30 + $0x20] sm:$0xff]  ;;  %v230_v14 = vld [vmem:[%s1002_s6 + $0x28] sm:$0xff]  ;;  %s1174_s12 = sld [smem:[#allocation14_spill]]  ;;  %s290_s22 = scalar_lea.sflag [#allocation4], %s998_s24 }
  0x6f   : > { %273 = vst [vmem:[%s1026_s2] sm:$0xff] %v257_v3  ;;  %v260_v12 = vadd.f32 %v244_v10, %v228_v9  ;;  %v246_v15 = vld [vmem:[%s1009_s30 + $0x28] sm:$0xff]  ;;  %274 = vst [vmem:[%s1026_s2 + $0x8] sm:$0xff] %v258_v7  ;;  %v261_v16 = vadd.f32 %v245_v13, %v229_v11  ;;  %v231_v18 = vld [vmem:[%s1002_s6 + $0x30] sm:$0xff]  ;;  %s618_s25 = scalar_lea.vmem %s1072_s21, 2048  ;;  %p1176_p3 = scmp.ne.s32.totalorder %s1160_s29, 0 }
  0x70   : > { %275 = vst [vmem:[%s1026_s2 + $0x10] sm:$0xff] %v259_v8  ;;  %v262_v17 = vadd.f32 %v246_v15, %v230_v14  ;;  %v247_v19 = vld [vmem:[%s1009_s30 + $0x30] sm:$0xff]  ;;  %v232_v20 = vld [vmem:[%s1002_s6 + $0x38] sm:$0xff]  ;;  %v233_v23 = vld [vmem:[%s1002_s6 + $0x40] sm:$0xff]  ;;  %p619_p0 = scmp.ne.s32.totalorder %s1072_s21, %s618_s25 }
  0x71   : > { %276 = vst [vmem:[%s1026_s2 + $0x18] sm:$0xff] %v260_v12  ;;  %v263_v21 = vadd.f32 %v247_v19, %v231_v18  ;;  %v248_v22 = vld [vmem:[%s1009_s30 + $0x38] sm:$0xff]  ;;  %v249_v24 = vld [vmem:[%s1009_s30 + $0x40] sm:$0xff]  ;;  %277 = vst [vmem:[%s1026_s2 + $0x20] sm:$0xff] %v261_v16 }
  0x72   : > { %278 = vst [vmem:[%s1026_s2 + $0x28] sm:$0xff] %v262_v17  ;;  %v264_v25 = vadd.f32 %v248_v22, %v232_v20  ;;  %v265_v26 = vadd.f32 %v249_v24, %v233_v23  ;;  %v234_v27 = vld [vmem:[%s1002_s6 + $0x48] sm:$0xff]  ;;  %v235_v29 = vld [vmem:[%s1002_s6 + $0x50] sm:$0xff]  ;;  %v236_v32 = vld [vmem:[%s1002_s6 + $0x58] sm:$0xff]  ;;  %p620_p8 = pnand %p619_p0, %p1176_p3 }
  0x73   : > { %v250_v28 = vld [vmem:[%s1009_s30 + $0x48] sm:$0xff]  ;;  %279 = vst [vmem:[%s1026_s2 + $0x30] sm:$0xff] %v263_v21  ;;  %v251_v31 = vld [vmem:[%s1009_s30 + $0x50] sm:$0xff]  ;;  %v252_v33 = vld [vmem:[%s1009_s30 + $0x58] sm:$0xff] }
  0x74   : > { %v266_v30 = vadd.f32 %v250_v28, %v234_v27  ;;  %280 = vst [vmem:[%s1026_s2 + $0x38] sm:$0xff] %v264_v25  ;;  %281 = vst [vmem:[%s1026_s2 + $0x40] sm:$0xff] %v265_v26  ;;  %v267_v34 = vadd.f32 %v251_v31, %v235_v29  ;;  %v268_v35 = vadd.f32 %v252_v33, %v236_v32  ;;  %v237_v36 = vld [vmem:[%s1002_s6 + $0x60] sm:$0xff]  ;;  %v238_v38 = vld [vmem:[%s1002_s6 + $0x68] sm:$0xff]  ;;  %s1175_s7 = smov %s1174_s12  ;;  %s1070_s3 = scalar_lea.hbm %s1174_s12, %s440_s16 }
  0x75   : > { %v253_v37 = vld [vmem:[%s1009_s30 + $0x60] sm:$0xff]  ;;  %v254_v40 = vld [vmem:[%s1009_s30 + $0x68] sm:$0xff]  ;;  %v239_v41 = vld [vmem:[%s1002_s6 + $0x70] sm:$0xff]  ;;  %p621_p7 = pneg %p620_p8 }
  0x76   : > { %282 = vst [vmem:[%s1026_s2 + $0x48] sm:$0xff] %v266_v30  ;;  %v269_v39 = vadd.f32 %v253_v37, %v237_v36  ;;  %v255_v42 = vld [vmem:[%s1009_s30 + $0x70] sm:$0xff]  ;;  %283 = vst [vmem:[%s1026_s2 + $0x50] sm:$0xff] %v267_v34  ;;  %v270_v43 = vadd.f32 %v254_v40, %v238_v38  ;;  %v240_v45 = vld [vmem:[%s1002_s6 + $0x78] sm:$0xff]  ;;  %s750_s6 = smov [#allocation7]  }
  0x77   : > { %284 = vst [vmem:[%s1026_s2 + $0x58] sm:$0xff] %v268_v35  ;;  %v271_v44 = vadd.f32 %v255_v42, %v239_v41  ;;  %v256_v46 = vld [vmem:[%s1009_s30 + $0x78] sm:$0xff]  ;;  %s622_s26 = sshll.u32 %s750_s6, 4  ;;  %s623_s26 = int_to_ptr.vmem [resolvable:$false] %s622_s26 }
  0x78   : > { %285 = vst [vmem:[%s1026_s2 + $0x60] sm:$0xff] %v269_v39  ;;  %v272_v47 = vadd.f32 %v256_v46, %v240_v45  ;;  %286 = vst [vmem:[%s1026_s2 + $0x68] sm:$0xff] %v270_v43  ;;  %s624_s9 = scalar_lea.vmem %s623_s26, 4096  ;;  %p625_p12 = scmp.lt.s32.totalorder %s1072_s21, %s623_s26 }
  0x79   : > { %287 = vst [vmem:[%s1026_s2 + $0x70] sm:$0xff] %v271_v44  ;;  %p626_p5 = scmp.lt.s32.totalorder %s624_s9, %s618_s25 }
  0x7a   : > { %288 = vst [vmem:[%s1026_s2 + $0x78] sm:$0xff] %v272_v47 }
  0x7b   : > { %p627_p1 = por %p626_p5, %p625_p12 }
  0x7d   : > { %p628_p6 = pnand %p627_p1, %p621_p7 }
  0x7f   : > { %631 = shalt.err (!%p628_p6)
}
  0x80   : > { %s632_s30 = scalar_lea.hbm %s1070_s3, 2048  ;;  %s636_s2 = scalar_lea.hbm %s1175_s7, 16384 }
  0x81   : > { %p633_p2 = scmp.ne.s32.totalorder %s1070_s3, %s632_s30  ;;  %p637_p4 = scmp.lt.u32.totalorder %s1070_s3, %s1175_s7 }
  0x82   : > { %p638_p10 = scmp.lt.u32.totalorder %s636_s2, %s632_s30  ;;  %p640_p0 = scmp.lt.u32.totalorder %s632_s30, %s1070_s3 }
  0x83   : > { %p634_p9 = pnand %p633_p2, %p1176_p3 }
  0x84   : > { %p639_p11 = por %p638_p10, %p637_p4 }
  0x85   : > { %p635_p13 = pneg %p634_p9 }
  0x86   : > { %p641_p8 = por %p640_p0, %p639_p11 }
  0x88   : > { %p642_p7 = pnand %p641_p8, %p635_p13 }
  0x8a   : > { %645 = shalt.err (!%p642_p7)
}
  0x8b   : > { %s751_s27 = smov 256   ;;  %s752_s23 = smov 16  }
  0x8c   : > { %451 = dma.vmem_to_hbm [thread:$0]  (%p1176_p3), %s1072_s21, 2048, %s1070_s3, %s290_s22, %s751_s27, %s751_s27, %s752_s23  }
  0x8d PF: > { %s1177_s12 = sld [smem:[#allocation11_spill]]  ;;  %p465_p12 = scmp.ge.s32.totalorder %s744_s19, 2 }
  0x8e   : > { %p1178_p5 = scmp.ne.s32.totalorder %s1161_s4, 0 }
  0x90   : > { %p461_p1 = pnand %p465_p12, %p1178_p5 }
  0x93   : > { %s321_s25 = sand.u32 1, %s1177_s12  }
  0x94   : > { %s322_s6 = scalar_lea.sflag [#allocation4], %s321_s25 }
  0x95   : > { %699 = dma.done.wait (!%p461_p1), %s322_s6, 2048  }
  0x96   : > { %701 = vsyncadd (!%p461_p1), %s322_s6, 4294965248  ;;  %s21_s19 = sadd.s32 1, %s744_s19   ;;  %s1179_s29 = sld [smem:[#allocation12_spill]] }
  0x97   : > { %p18_p6 = scmp.ge.s32.totalorder %s21_s19, 10   ;;  %s1180_s24 = sld [smem:[#allocation13_spill]] }
  0x98   : > { %s1181_s9 = smov %s708_s10  ;;  %s1182_s10 = smov %s712_s11 }
  0x99   : > { %s1183_s11 = smov %s937_s8  ;;  %s1184_s12 = smov %s720_s13 }
  0x9a   : > { %s1185_s13 = smov %s724_s14  ;;  %s1186_s14 = smov %s872_s5 }
  0x9b   : > { %s1187_s15 = smov %s736_s17  ;;  %s1188_s16 = smov %s740_s18 }
  0x9c   : > { %s1189_s17 = smov %s1179_s29  ;;  %20 = sbr.rel (!%p18_p6) target bundleno = 13 (0xd), region = 86 }
  0x9d   : > { %s1190_s18 = smov %s1180_s24 }
  0xa3   :  { %327 = vsyncpa [#allocation3], 1 }
  0xa4   :  { %329 = vsyncpa [#allocation3 + $0x1], 1 }
  0xa5   :  { %330 = vsyncpa [#allocation6], 1 }
  0xa6   :  { %332 = vsyncpa [#allocation6 + $0x1], 1 }
  0xa7   :  { %333 = vsyncpa [#allocation4], 1 }
  0xa8   :  { %335 = vsyncpa [#allocation4 + $0x1], 1 }

</bundles_post_ra>
